<compile_context>
chip_gen: v5e
topology: v5e:2x2
jax: 0.10.0
libtpu: 0.0.40
codegen_flags: <defaults>
</compile_context>

<pallas_src>
import functools

import jax
import jax.numpy as jnp
from jax.experimental import pallas as pl
from jax.experimental.pallas import tpu as pltpu

LN_EPS = 1e-5  # torch.nn.LayerNorm default


def _round_up(x, m):
    return (x + m - 1) // m * m


def _cdiv(a, b):
    return (a + b - 1) // b


def _device_vmem_capacity_bytes():
    try:
        return int(pltpu.get_tpu_info().vmem_capacity_bytes)
    except Exception:
        return 64 * 1024 * 1024  # conservative: v7x per-TensorCore VMEM


def _layernorm_f32(x_ref, gamma_ref, beta_ref):
    """f32 LayerNorm over the last axis; single pass over the tile."""
    x = x_ref[...].astype(jnp.float32)
    mean = jnp.mean(x, axis=-1, keepdims=True)
    mean_sq = jnp.mean(x * x, axis=-1, keepdims=True)
    var = mean_sq - mean * mean
    inv = jax.lax.rsqrt(var + LN_EPS)
    return ((x - mean) * inv * gamma_ref[...].astype(jnp.float32)
            + beta_ref[...].astype(jnp.float32))


def _resident_kernel(x_ref, gamma_ref, beta_ref, w_ref, bias_ref, o_ref):
    # Grid = (row tiles,).  W has a constant index_map -> DMA'd once, resident.
    y = _layernorm_f32(x_ref, gamma_ref, beta_ref).astype(w_ref.dtype)
    out = jnp.dot(y, w_ref[...], preferred_element_type=jnp.float32)
    o_ref[...] = (out + bias_ref[...].astype(jnp.float32)).astype(o_ref.dtype)


def _tiled_kernel(x_ref, gamma_ref, beta_ref, w_ref, bias_ref, o_ref, y_ref):
    # Grid = (row tiles, D_out tiles).  LN of the current row tile is computed
    # once at j == 0 (f32 statistics), cast to the MXU operand dtype and
    # cached in VMEM scratch for all j tiles of this row block.
    @pl.when(pl.program_id(1) == 0)
    def _():
        y_ref[...] = _layernorm_f32(x_ref, gamma_ref, beta_ref).astype(y_ref.dtype)

    out = jnp.dot(y_ref[...], w_ref[...], preferred_element_type=jnp.float32)
    o_ref[...] = (out + bias_ref[...].astype(jnp.float32)).astype(o_ref.dtype)


def _plan(rows, d, d_out, x_isz, w_isz, out_isz, mm_isz, tile_rows, budget):
    """Return (tm, tn, w_resident, estimated_vmem_bytes)."""
    tm = min(_round_up(tile_rows, 8), _round_up(rows, 8))
    # Megacore: keep at least 2 row tiles when there is enough work so both
    # v7x TensorCores get a share of the 'parallel' axis.
    if rows > 8 and _cdiv(rows, tm) < 2:
        tm = max(8, _round_up(_cdiv(rows, 2), 8))

    def vmem_use(tm_, tn_, resident):
        use = 2 * tm_ * d * x_isz            # x tile (double buffered)
        use += 2 * d * tn_ * w_isz           # W block
        use += 2 * tm_ * tn_ * out_isz       # output tile
        use += 2 * (2 * d + tn_) * 4         # gamma / beta / bias
        if not resident:
            use += tm_ * d * mm_isz          # cached LN(x) scratch
        return use

    # Fast path: whole weight resident in VMEM, single grid axis.
    if vmem_use(tm, d_out, True) <= budget:
        return tm, d_out, True, vmem_use(tm, d_out, True)

    # Tiled fallback: largest lane-dense tn that fits; shrink tm if needed.
    cands = {d_out}
    for m in range(d_out // 128, 0, -1):
        tn_ = m * 128
        if d_out % tn_ == 0:
            cands.add(tn_)
    for tn_ in (512, 256, 128):
        if tn_ < d_out:
            cands.add(tn_)                   # ragged last block is fine
    cands = sorted(cands, reverse=True)

    tm_ = tm
    while True:
        for tn_ in cands:
            if vmem_use(tm_, tn_, False) <= budget:
                return tm_, tn_, False, vmem_use(tm_, tn_, False)
        if tm_ <= 64:
            break
        tm_ = max(64, _round_up(tm_ // 2, 8))
    tn_ = min(128, d_out)
    return tm_, tn_, False, vmem_use(tm_, tn_, False)


@functools.partial(
    jax.jit,
    static_argnames=("tile_rows", "use_bf16_matmul", "vmem_budget_bytes"))
def prenorm_linear(x, gamma, beta, w, bias, *, tile_rows=512,
                   use_bf16_matmul=False, vmem_budget_bytes=None):
    """PreNorm(dim, nn.Linear(dim, dim_out))(x) == Linear(LayerNorm(x)).

    x: (B, N, D); gamma/beta: (D,); w: (D, D_out); bias: (D_out,).
    """
    B, N, D = x.shape
    D_out = w.shape[1]
    rows = B * N

    # MXU operand dtype (accumulation is always f32).  Native bf16 when the
    # weight is bf16; optionally cast f32 weights to bf16 for MXU throughput.
    if w.dtype == jnp.bfloat16 or use_bf16_matmul:
        mm_dtype = jnp.bfloat16
    else:
        mm_dtype = w.dtype
    w_mm = w if w.dtype == jnp.dtype(mm_dtype) else w.astype(mm_dtype)
    mm_isz = jnp.dtype(mm_dtype).itemsize

    cap = _device_vmem_capacity_bytes()
    budget = int(cap * 0.6) if vmem_budget_bytes is None else int(vmem_budget_bytes)

    tm, tn, resident, plan_bytes = _plan(
        rows, D, D_out,
        x.dtype.itemsize, mm_isz, x.dtype.itemsize, mm_isz,
        tile_rows, budget)

    vmem_limit = min(int(cap * 0.9),
                     max(int(plan_bytes * 1.5), 32 * 1024 * 1024))

    x2 = x.reshape(rows, D)
    gamma2 = gamma.reshape(1, D)
    beta2 = beta.reshape(1, D)
    bias2 = bias.reshape(1, D_out)

    num_i = _cdiv(rows, tm)
    out_shape = jax.ShapeDtypeStruct((rows, D_out), x.dtype)

    if resident:
        grid = (num_i,)
        in_specs = [
            pl.BlockSpec((tm, D), lambda i: (i, 0)),        # x row tile
            pl.BlockSpec((1, D), lambda i: (0, 0)),         # gamma
            pl.BlockSpec((1, D), lambda i: (0, 0)),         # beta
            pl.BlockSpec((D, D_out), lambda i: (0, 0)),     # W (resident)
            pl.BlockSpec((1, D_out), lambda i: (0, 0)),     # bias
        ]
        out_specs = pl.BlockSpec((tm, D_out), lambda i: (i, 0))
        scratch_shapes = []
        kernel = _resident_kernel
        dim_sem = ("parallel",)
    else:
        num_j = _cdiv(D_out, tn)
        grid = (num_i, num_j)
        in_specs = [
            pl.BlockSpec((tm, D), lambda i, j: (i, 0)),     # x row tile
            pl.BlockSpec((1, D), lambda i, j: (0, 0)),      # gamma
            pl.BlockSpec((1, D), lambda i, j: (0, 0)),      # beta
            pl.BlockSpec((D, tn), lambda i, j: (0, j)),     # W column tile
            pl.BlockSpec((1, tn), lambda i, j: (0, j)),     # bias tile
        ]
        out_specs = pl.BlockSpec((tm, tn), lambda i, j: (i, j))
        scratch_shapes = [pltpu.VMEM((tm, D), mm_dtype)]    # cached LN(x)
        kernel = _tiled_kernel
        dim_sem = ("parallel", "arbitrary")

    out = pl.pallas_call(
        kernel,
        out_shape=out_shape,
        grid_spec=pltpu.PrefetchScalarGridSpec(
            num_scalar_prefetch=0,
            grid=grid,
            in_specs=in_specs,
            out_specs=out_specs,
            scratch_shapes=scratch_shapes,
        ),
        compiler_params=pltpu.CompilerParams(
            dimension_semantics=dim_sem,
            vmem_limit_bytes=vmem_limit),
    )(x2, gamma2, beta2, w_mm, bias2)

    return out.reshape(B, N, D_out)


def reference(x, gamma, beta, w, bias):
    x32 = x.astype(jnp.float32)
    mean = jnp.mean(x32, axis=-1, keepdims=True)
    var = jnp.mean((x32 - mean) ** 2, axis=-1, keepdims=True)
    y = ((x32 - mean) / jnp.sqrt(var + LN_EPS) * gamma.astype(jnp.float32)
         + beta.astype(jnp.float32))
    return (y @ w.astype(jnp.float32) + bias.astype(jnp.float32)).astype(x.dtype)


if __name__ == "__main__":
    key = jax.random.PRNGKey(0)
    kx, kw, kb, kx2, kw2, kb2 = jax.random.split(key, 6)

    # --- Test 1: small f32 case (W-resident path), shapes implied by module --
    B, N, D = 2, 8, 32  # batch, seq, hidden (dim)
    x = jax.random.normal(kx, (B, N, D), dtype=jnp.float32)
    gamma = jnp.ones((D,), dtype=jnp.float32)    # nn.LayerNorm init
    beta = jnp.zeros((D,), dtype=jnp.float32)
    w = jax.random.normal(kw, (D, D), dtype=jnp.float32) * 0.02
    bias = jax.random.normal(kb, (D,), dtype=jnp.float32) * 0.02

    out = jax.block_until_ready(prenorm_linear(x, gamma, beta, w, bias))
    ref = reference(x, gamma, beta, w, bias)
    assert out.shape == (B, N, D)  # D_out == D here
    assert jnp.allclose(out, ref, atol=3e-5, rtol=3e-5)

    # --- Test 2: bf16 weights, ragged rows (no host pad/slice), resident W ---
    B2, N2, D2, DO2 = 2, 90, 256, 384   # rows=180 -> 3 row tiles (last ragged)
    x2 = jax.random.normal(kx2, (B2, N2, D2), dtype=jnp.float32)
    gamma2 = jnp.ones((D2,), dtype=jnp.float32) * 1.1
    beta2 = jnp.full((D2,), 0.05, dtype=jnp.float32)
    w2 = (jax.random.normal(kw2, (D2, DO2), dtype=jnp.float32) * 0.02
          ).astype(jnp.bfloat16)
    bias2 = jax.random.normal(kb2, (DO2,), dtype=jnp.float32) * 0.02

    out2 = jax.block_until_ready(
        prenorm_linear(x2, gamma2, beta2, w2, bias2, tile_rows=64))
    ref2 = reference(x2, gamma2, beta2, w2.astype(jnp.float32), bias2)
    assert out2.shape == (B2, N2, DO2)
    # bf16 MXU operands (f32 accumulate) vs f32 reference -> looser tolerance.
    assert jnp.allclose(out2, ref2, atol=3e-2, rtol=3e-2)

    # --- Test 3: force the W-tiled fallback path via a tiny VMEM budget ------
    w3 = jax.random.normal(kw2, (D2, DO2), dtype=jnp.float32) * 0.02
    bias3 = jax.random.normal(kb, (DO2,), dtype=jnp.float32) * 0.02
    out3 = jax.block_until_ready(
        prenorm_linear(x2, gamma2, beta2, w3, bias3, tile_rows=64,
                       vmem_budget_bytes=600 * 1024))
    ref3 = reference(x2, gamma2, beta2, w3, bias3)
    assert out3.shape == (B2, N2, DO2)
    assert jnp.allclose(out3, ref3, atol=1e-4, rtol=1e-4)

    print("KERNEL_OK")
</pallas_src>

<mosaic_0001>
module attributes {stable_mosaic.version = 11 : i64} {
  func.func @_resident_kernel(%arg0: i32, %arg1: memref<8x32xf32, #tpu.memory_space<vmem>>, %arg2: memref<1x32xf32, #tpu.memory_space<vmem>>, %arg3: memref<1x32xf32, #tpu.memory_space<vmem>>, %arg4: memref<32x32xf32, #tpu.memory_space<vmem>>, %arg5: memref<1x32xf32, #tpu.memory_space<vmem>>, %arg6: memref<8x32xf32, #tpu.memory_space<vmem>>) attributes {dimension_semantics = [#tpu.dimension_semantics<parallel>], iteration_bounds = array<i64: 2>, scalar_prefetch = 0 : i64, scratch_operands = 0 : i64, tpu.core_type = #tpu.core_type<tc>, window_params = [{transform_indices = @transform_0, window_bounds = array<i64: 8, 32>}, {pipeline_mode = #tpu.pipeline_mode<synchronous>, transform_indices = @transform_1, window_bounds = array<i64: 1, 32>}, {pipeline_mode = #tpu.pipeline_mode<synchronous>, transform_indices = @transform_2, window_bounds = array<i64: 1, 32>}, {pipeline_mode = #tpu.pipeline_mode<synchronous>, transform_indices = @transform_3, window_bounds = array<i64: 32, 32>}, {pipeline_mode = #tpu.pipeline_mode<synchronous>, transform_indices = @transform_4, window_bounds = array<i64: 1, 32>}, {transform_indices = @transform_5, window_bounds = array<i64: 8, 32>}]} {
    %c0 = arith.constant 0 : index
    %c0_0 = arith.constant 0 : index
    %0 = vector.load %arg1[%c0, %c0_0] : memref<8x32xf32, #tpu.memory_space<vmem>>, vector<8x32xf32>
    %cst = arith.constant dense<0.000000e+00> : vector<8xf32>
    %1 = vector.multi_reduction <add>, %0, %cst [1] : vector<8x32xf32> to vector<8xf32>
    %2 = vector.shape_cast %1 : vector<8xf32> to vector<8x1xf32>
    %cst_1 = arith.constant 3.200000e+01 : f32
    %3 = vector.broadcast %cst_1 : f32 to vector<8x1xf32>
    %4 = arith.divf %2, %3 : vector<8x1xf32>
    %5 = arith.mulf %0, %0 : vector<8x32xf32>
    %cst_2 = arith.constant dense<0.000000e+00> : vector<8xf32>
    %6 = vector.multi_reduction <add>, %5, %cst_2 [1] : vector<8x32xf32> to vector<8xf32>
    %7 = vector.shape_cast %6 : vector<8xf32> to vector<8x1xf32>
    %cst_3 = arith.constant 3.200000e+01 : f32
    %8 = vector.broadcast %cst_3 : f32 to vector<8x1xf32>
    %9 = arith.divf %7, %8 : vector<8x1xf32>
    %10 = arith.mulf %4, %4 : vector<8x1xf32>
    %11 = arith.subf %9, %10 : vector<8x1xf32>
    %cst_4 = arith.constant 9.99999974E-6 : f32
    %12 = vector.broadcast %cst_4 : f32 to vector<8x1xf32>
    %13 = arith.addf %11, %12 : vector<8x1xf32>
    %14 = math.rsqrt %13 : vector<8x1xf32>
    %15 = vector.broadcast %4 : vector<8x1xf32> to vector<8x32xf32>
    %16 = arith.subf %0, %15 : vector<8x32xf32>
    %17 = vector.broadcast %14 : vector<8x1xf32> to vector<8x32xf32>
    %18 = arith.mulf %16, %17 : vector<8x32xf32>
    %c0_5 = arith.constant 0 : index
    %c0_6 = arith.constant 0 : index
    %19 = vector.load %arg2[%c0_5, %c0_6] : memref<1x32xf32, #tpu.memory_space<vmem>>, vector<1x32xf32>
    %20 = vector.broadcast %19 : vector<1x32xf32> to vector<8x32xf32>
    %21 = arith.mulf %18, %20 : vector<8x32xf32>
    %c0_7 = arith.constant 0 : index
    %c0_8 = arith.constant 0 : index
    %22 = vector.load %arg3[%c0_7, %c0_8] : memref<1x32xf32, #tpu.memory_space<vmem>>, vector<1x32xf32>
    %23 = vector.broadcast %22 : vector<1x32xf32> to vector<8x32xf32>
    %24 = arith.addf %21, %23 : vector<8x32xf32>
    %c0_9 = arith.constant 0 : index
    %c0_10 = arith.constant 0 : index
    %25 = vector.load %arg4[%c0_9, %c0_10] : memref<32x32xf32, #tpu.memory_space<vmem>>, vector<32x32xf32>
    %cst_11 = arith.constant dense<0.000000e+00> : vector<8x32xf32>
    %26 = tpu.matmul %24, %25, %cst_11 {dimension_numbers = #tpu.dot_dimension_numbers<[1], [0], [0], [1], [0, 0, 1, 1], [], []>} : vector<8x32xf32>, vector<32x32xf32>, vector<8x32xf32> -> vector<8x32xf32>
    %c0_12 = arith.constant 0 : index
    %c0_13 = arith.constant 0 : index
    %27 = vector.load %arg5[%c0_12, %c0_13] : memref<1x32xf32, #tpu.memory_space<vmem>>, vector<1x32xf32>
    %28 = vector.broadcast %27 : vector<1x32xf32> to vector<8x32xf32>
    %29 = arith.addf %26, %28 : vector<8x32xf32>
    %c0_14 = arith.constant 0 : index
    %c0_15 = arith.constant 0 : index
    %30 = vector.load %arg6[%c0_14, %c0_15] : memref<8x32xf32, #tpu.memory_space<vmem>>, vector<8x32xf32>
    tpu.vector_store %arg6[%c0_14, %c0_15], %29 {strides = array<i32>} : memref<8x32xf32, #tpu.memory_space<vmem>>, vector<8x32xf32>,
    return
  }
  func.func @transform_0(%arg0: i32) -> (i32, i32) {
    %c0_i32 = arith.constant 0 : i32
    %c0_i32_0 = arith.constant 0 : i32
    return %arg0, %c0_i32 : i32, i32
  }
  func.func @transform_1(%arg0: i32) -> (i32, i32) {
    %c0_i32 = arith.constant 0 : i32
    %c0_i32_0 = arith.constant 0 : i32
    %c0_i32_1 = arith.constant 0 : i32
    return %c0_i32, %c0_i32_0 : i32, i32
  }
  func.func @transform_2(%arg0: i32) -> (i32, i32) {
    %c0_i32 = arith.constant 0 : i32
    %c0_i32_0 = arith.constant 0 : i32
    %c0_i32_1 = arith.constant 0 : i32
    return %c0_i32, %c0_i32_0 : i32, i32
  }
  func.func @transform_3(%arg0: i32) -> (i32, i32) {
    %c0_i32 = arith.constant 0 : i32
    %c0_i32_0 = arith.constant 0 : i32
    %c0_i32_1 = arith.constant 0 : i32
    return %c0_i32, %c0_i32_0 : i32, i32
  }
  func.func @transform_4(%arg0: i32) -> (i32, i32) {
    %c0_i32 = arith.constant 0 : i32
    %c0_i32_0 = arith.constant 0 : i32
    %c0_i32_1 = arith.constant 0 : i32
    return %c0_i32, %c0_i32_0 : i32, i32
  }
  func.func @transform_5(%arg0: i32) -> (i32, i32) {
    %c0_i32 = arith.constant 0 : i32
    %c0_i32_0 = arith.constant 0 : i32
    return %arg0, %c0_i32 : i32, i32
  }
}

</mosaic_0001>

<bundles_post_ra>
// kernel: prenorm_linear.1
= control target key start
LH: loop header
LB: loop body
LE: loop exit
PB: predicated region body
PF: predicated region fallthrough
CT: control target
= control target key end

     0   :  { %10 = vsyncpa [#allocation3], 0  ;;  %s831_s0 = inlined_call_operand.hbm [shape: f32[16,32], index: 0, kind: input, shape index: {}]   ;;  %s832_s1 = inlined_call_operand.vmem [shape: f32[1,32], index: 1, kind: input, shape index: {}]   ;;  %s833_s2 = inlined_call_operand.vmem [shape: f32[1,32], index: 2, kind: input, shape index: {}]   ;;  %s834_s3 = inlined_call_operand.hbm [shape: f32[32,32], index: 3, kind: input, shape index: {}]   ;;  %s835_s4 = inlined_call_operand.vmem [shape: f32[1,32], index: 4, kind: input, shape index: {}]   ;;  %s836_s5 = inlined_call_operand.hbm [shape: f32[16,32], index: 5, kind: output, shape index: {}]  }
   0x1   :  { %12 = vsyncpa [#allocation3 + $0x1], 0 }
   0x2   :  { %13 = vsyncpa [#allocation6], 0 }
   0x3   :  { %14 = vsyncpa [#allocation4], 0 }
   0x4   :  { %16 = vsyncpa [#allocation4 + $0x1], 0  ;;  %s678_s18 = smov 0   ;;  %s680_s19 = smov 0  }
   0x5   :  { %s682_s20 = smov 0   ;;  %s684_s21 = smov 0  }
   0x6 LB: > { %s180_s24 = sshll.u32 %s834_s3, 4  ;;  %s702_s25 = sadd.s32 4294967295, %s642_s21   ;;  %s642_s21 = sphi %s684_s21, %s846_s21   ;;  %s638_s20 = sphi %s682_s20, %s845_s20   ;;  %s634_s19 = sphi %s680_s19, %s844_s19   ;;  %s630_s18 = sphi %s678_s18, %s843_s18   ;;  %s181_s24 = int_to_ptr.hbm [resolvable:$true] %s180_s24 }
   0x7   : > { %p431_p0 = scmp.ge.s32.totalorder %s642_s21, 1  ;;  %p43_p1 = scmp.eq.s32.totalorder %s702_s25, 0 }
   0x8   : > { %p163_p2 = scmp.lt.s32.totalorder %s642_s21, 3  ;;  %s644_s27 = smov [#allocation5]  }
   0x9   : > { %s182_s28 = sshll.u32 %s644_s27, 4  ;;  %s645_s29 = smov 128   ;;  %s183_s28 = int_to_ptr.vmem [resolvable:$true] %s182_s28 }
   0xa   : > { %p707_p3 = pnand %p431_p0, %p163_p2  ;;  %s646_s30 = smov 8  }
   0xb   : > { %s430_s6 = sadd.s32 4294967294, %s642_s21   ;;  %s718_s7 = sadd.s32 1, %s642_s21  }
   0xc   : > { %p453_p4 = pneg %p707_p3  ;;  %s29_s8 = sadd.s32 1, %s638_s20 }
   0xd   : > { %s26_s9 = ssub.s32 %s642_s21, %s718_s7  ;;  %p36_p7 = scmp.ne.s32.totalorder %s638_s20, %s634_s19 }
   0xe   : > { %p454_p6 = pnand %p453_p4, %p43_p1  ;;  %p27_p8 = scmp.eq.s32.totalorder %s26_s9, 0 }
   0xf   : > { %p37_p9 = scmp.eq.s32.totalorder %s642_s21, 0  ;;  %p42_p10 = scmp.ne.s32.totalorder %s634_s19, %s630_s18 }
  0x10   : > { %456 = dma.hbm_to_vmem [thread:$0]  (!%p454_p6), %s181_s24, 512, %s183_s28, [#allocation6], %s645_s29, %s645_s29, %s646_s30  }
  0x11   : > { %p150_p11 = scmp.eq.s32.totalorder %s702_s25, 1  ;;  %p734_p12 = por %p43_p1, %p42_p10 }
  0x12   : > { %s730_s10 = scalar_select %p27_p8, %s638_s20, %s29_s8  }
  0x13   : > { %p738_p13 = por %p150_p11, %p36_p7  ;;  %p156_p0 = scmp.eq.s32.totalorder %s430_s6, 1 }
  0x14   : > { %p38_p2 = por %p37_p9, %p36_p7  ;;  %s199_s13 = sand.u32 1, %s638_s20  }
  0x15   : > { %p743_p4 = por %p156_p0, %p42_p10  ;;  %p466_p6 = scmp.lt.s32.totalorder %s642_s21, 2 }
  0x16   : > { %s434_s15 = sshll.u32 %s199_s13, 3  ;;  %s435_s16 = sshll.u32 %s642_s21, 3 }
  0x17   : > { %s207_s23 = scalar_lea.hbm %s831_s0, %s435_s16  ;;  %s203_s27 = scalar_lea.vmem [#allocation2], %s434_s15 }
  0x18   : > { %s209_s24 = sshll.u32 %s207_s23, 4  ;;  %s211_s28 = sshll.u32 %s203_s27, 4  ;;  %s210_s24 = int_to_ptr.hbm [resolvable:$true] %s209_s24  ;;  %s212_s28 = int_to_ptr.vmem [resolvable:$true] %s211_s28 }
  0x19   : > { %p752_p8 = pnand %p466_p6, %p38_p2  ;;  %s200_s30 = scalar_lea.sflag [#allocation3], %s199_s13 }
  0x1a   : > { %s542_s6 = sshra.s32 %s210_s24, 4  ;;  %s549_s15 = scalar_lea.hbm %s831_s0, 16  ;;  %s543_s6 = int_to_ptr.hbm [resolvable:$true] %s542_s6 }
  0x1b   : > { %s544_s8 = scalar_lea.hbm %s543_s6, 8  ;;  %p546_p9 = pneg %p752_p8 }
  0x1c   : > { %p545_p7 = scmp.ne.s32.totalorder %s543_s6, %s544_s8  ;;  %p550_p0 = scmp.lt.s32.totalorder %s543_s6, %s831_s0 }
  0x1d   : > { %p551_p2 = scmp.lt.s32.totalorder %s549_s15, %s544_s8 }
  0x1e   : > { %p547_p10 = pnand %p546_p9, %p545_p7 }
  0x1f   : > { %p552_p6 = por %p551_p2, %p550_p0 }
  0x20   : > { %p548_p11 = pneg %p547_p10 }
  0x22   : > { %p553_p5 = pnand %p552_p6, %p548_p11 }
  0x24   : > { %556 = shalt.err (!%p553_p5)
}
  0x25   : > { %460 = dma.hbm_to_vmem [thread:$0]  (!%p752_p8), %s210_s24, 128, %s212_s28, %s200_s30  }
  0x26   : > { %220 = sbr.rel (%p707_p3) target bundleno = 333 (0x14d), region = 40  ;;  %s769_s13 = sand.u32 (!%p707_p3), 1, %s634_s19  }
  0x27   : > { %s437_s23 = sshll.u32 (!%p707_p3), %s769_s13, 3  ;;  %s223_s27 = scalar_lea.sflag (!%p707_p3), [#allocation3], %s769_s13 }
  0x28   : > { %s226_s6 = scalar_lea.vmem (!%p707_p3), [#allocation2], %s437_s23 }
  0x2b   : > { %617 = dma.done.wait (%p734_p12), %s223_s27, 128  }
  0x2c   : > { %619 = vsyncadd (%p734_p12), %s223_s27, 4294967168 }
  0x2d   : > { %621 = dma.done.wait (%p43_p1), [#allocation6], 512  }
  0x2e   : > { %623 = vsyncadd (%p43_p1), [#allocation6], 4294966784  ;;  %vm260_vm0 = vcmask 261120   ;;  %v259_v0 = vld [vmem:[%s226_s6] sm:$0xff]  ;;  %v647_v4 = vmov 32.0   ;;  %v303_v13 = vld [vmem:[#allocation5 + $0x8] sm:$0xff] }
  0x2f   : > { %v261_v1 = vsel %vm260_vm0, %v259_v0, 0.0  ;;  %v272_v2 = vmul.f32 %v259_v0, %v259_v0  ;;  %508 = vrcp.f32 %v647_v4  ;;  %v305_v10 = vld [vmem:[#allocation5 + $0x18] sm:$0xff]  ;;  %v304_v11 = vld [vmem:[#allocation5 + $0x10] sm:$0xff]  ;;  %v302_v15 = vld [vmem:[#allocation5] sm:$0xff]  ;;  %s442_s29 = sshll.u32 %s702_s25, 3  ;;  %s258_s17 = scalar_lea.vmem [#allocation7], %s437_s23 }
  0x30   : > { %262 = vadd.xlane.f32.xlu0 %v261_v1  ;;  %325 = vmatpush.msra.mxu0 %v305_v10  ;;  %v505_v29 = vld [vmem:[%s832_s1] ss:$0 sm:$0xff]  ;;  %s345_s9 = scalar_lea.hbm %s836_s5, %s442_s29  ;;  %s347_s22 = sshll.u32 %s258_s17, 4  ;;  %s348_s22 = int_to_ptr.vmem [resolvable:$true] %s347_s22 }
  0x31   : > { %v273_v3 = vsel %vm260_vm0, %v272_v2, 0.0  ;;  %v506_v32 = vld [vmem:[%s833_s2] ss:$0 sm:$0xff]  ;;  %s349_s27 = sshll.u32 %s345_s9, 4  ;;  %s335_s25 = scalar_lea.sflag [#allocation4], %s769_s13  ;;  %s350_s27 = int_to_ptr.hbm [resolvable:$true] %s349_s27 }
  0x32   : > { %326 = vmatpush.msra.mxu0 %v304_v11  ;;  %v507_v35 = vld [vmem:[%s835_s4] ss:$0 sm:$0xff]  ;;  %s586_s6 = sshra.s32 %s350_s27, 4  ;;  %s592_s23 = scalar_lea.hbm %s836_s5, 16  ;;  %s587_s6 = int_to_ptr.hbm [resolvable:$true] %s586_s6 }
  0x33   : > { %s588_s26 = scalar_lea.hbm %s587_s6, 8  ;;  %p593_p12 = scmp.lt.s32.totalorder %s587_s6, %s836_s5 }
  0x34   : > { %327 = vmatpush.msra.mxu0 %v303_v13  ;;  %p589_p1 = scmp.ne.s32.totalorder %s587_s6, %s588_s26  ;;  %p594_p8 = scmp.lt.s32.totalorder %s592_s23, %s588_s26 }
  0x35   : > { %v509_v5 = vpop.eup %508 }
  0x36   : > { %v265_v6 = vmul.f32 32.0, %v509_v5  ;;  %vm269_vm1 = vweird.f32 %v509_v5  ;;  %328 = vmatpush.msra.mxu0 %v302_v15  ;;  %p590_p3 = pnand %p589_p1, %p738_p13  ;;  %p595_p7 = por %p594_p8, %p593_p12 }
  0x38   : > { %274 = vadd.xlane.f32.xlu0 %v273_v3  ;;  %v266_v7 = vsub.f32 1.0, %v265_v6  ;;  %p591_p5 = pneg %p590_p3 }
  0x3a   : > { %v267_v8 = vmul.f32 %v509_v5, %v266_v7  ;;  %p596_p9 = pnand %p595_p7, %p591_p5 }
  0x3c   : > { %v268_v9 = vadd.f32 %v509_v5, %v267_v8 }
  0x3e   : > { %v270_v14 = vsel %vm269_vm1, %v509_v5, %v268_v9 }
  0xa3   : > { %v263_v12 = vpop.xlane.xlu0 %262 }
  0xa4   : > { %v271_v16 = vmul.f32 %v270_v14, %v263_v12 }
  0xa6   : > { %v277_v18 = vmul.f32 %v271_v16, %v271_v16  ;;  %v290_v28 = vsub.f32 %v259_v0, %v271_v16 }
  0xab   : > { %v275_v17 = vpop.xlane.xlu0 %274 }
  0xac   : > { %v276_v19 = vmul.f32 %v275_v17, %v270_v14 }
  0xae   : > { %v278_v20 = vsub.f32 %v276_v19, %v277_v18 }
  0xb0   : > { %v279_v21 = vadd.f32 1e-05, %v278_v20 }
  0xb2   : > { %510 = vrsqrt.f32 %v279_v21  ;;  %vm286_vm3 = vweird.f32 %v279_v21 }
  0xb8   : > { %v511_v22 = vpop.eup %510 }
  0xb9   : > { %v281_v23 = vmul.f32 %v511_v22, %v279_v21  ;;  %vm287_vm2 = vweird.f32 %v511_v22 }
  0xba   : > { %vm288_vm4 = vmor %vm286_vm3, %vm287_vm2 }
  0xbb   : > { %v282_v24 = vmul.f32 %v511_v22, %v281_v23 }
  0xbd   : > { %v283_v25 = vmul.f32 0.5, %v282_v24 }
  0xbf   : > { %v284_v26 = vsub.f32 1.5, %v283_v25 }
  0xc1   : > { %v285_v27 = vmul.f32 %v511_v22, %v284_v26 }
  0xc3   : > { %v289_v30 = vsel %vm288_vm4, %v511_v22, %v285_v27 }
  0xc4   : > { %v291_v31 = vmul.f32 %v290_v28, %v289_v30 }
  0xc6   : > { %v296_v33 = vmul.f32 %v505_v29, %v291_v31 }
  0xc8   : > { %v301_v34 = vadd.f32 %v506_v32, %v296_v33 }
  0xca   : > { %440 = vmatmul.msk.f32.vlgmr.msra.gmra.mxu0 %vm260_vm0, %v301_v34 }
 0x147   : > { %v330_v36 = vpop.f32.mrf.mxu0 }
 0x148   : > { %v331_v37 = vadd.f32 %v507_v35, %v330_v36 }
 0x14a   : > { %333 = vst.msk [vmem:[%s258_s17] sm:$0xff] %vm260_vm0, %v331_v37 }
 0x14b   : > { %599 = shalt.err (!%p596_p9)
}
 0x14c   : > { %451 = dma.vmem_to_hbm [thread:$0]  (%p738_p13), %s348_s22, 128, %s350_s27, %s335_s25  }
 0x14d PF: > { %s361_s13 = sand.u32 1, %s630_s18   ;;  %p842_p10 = scmp.ge.s32.totalorder %s642_s21, 2 }
 0x14e   : > { %s362_s30 = scalar_lea.sflag [#allocation4], %s361_s13 }
 0x14f   : > { %p462_p11 = pnand %p842_p10, %p743_p4 }
 0x151   : > { %p463_p0 = pneg %p462_p11 }
 0x153   : > { %625 = dma.done.wait (%p463_p0), %s362_s30, 128  }
 0x154   : > { %627 = vsyncadd (%p463_p0), %s362_s30, 4294967168  ;;  %p19_p2 = scmp.ge.s32.totalorder %s718_s7, 4   ;;  %s843_s18 = smov %s634_s19 }
 0x155   : > { %s844_s19 = smov %s638_s20  ;;  %s845_s20 = smov %s730_s10 }
 0x156   : > { %s846_s21 = smov %s718_s7  ;;  %21 = sbr.rel (!%p19_p2) target bundleno = 6 (0x6), region = 89 }
 0x15b   :  { %368 = vsyncpa [#allocation3], 1 }
 0x15c   :  { %370 = vsyncpa [#allocation3 + $0x1], 1 }
 0x15d   :  { %371 = vsyncpa [#allocation6], 1 }
 0x15e   :  { %372 = vsyncpa [#allocation4], 1 }
 0x15f   :  { %374 = vsyncpa [#allocation4 + $0x1], 1 }

</bundles_post_ra>
